<compile_context>
chip_gen: v5e
topology: v5e:2x2
jax: 0.10.0
libtpu: 0.0.40
codegen_flags: <defaults>
</compile_context>

<pallas_src>
import functools

import jax
import jax.numpy as jnp
from jax.experimental import pallas as pl
from jax.experimental.pallas import tpu as pltpu


EPS = 1e-5
_MIB = 1 << 20
# Conservative VMEM working-set budget (v7x has 64 MiB physical; leave headroom).
_VMEM_BUDGET = 48 * _MIB


def encoder_layer_kernel(x_ref, wt_ref, p_ref, o_ref, acc_ref, *,
                         inv_b, tile_k, n_k, x_resident):
    """One (feature-tile, K-tile) grid step.

    x_ref:   (B, D_in_pad) if x_resident else (B, TILE_K)   bf16 input
    wt_ref:  (TILE_K, TILE_F)  bf16 pre-transposed weight tile
    p_ref:   (2, TILE_F) f32   row 0 = gamma, row 1 = beta
    o_ref:   (B, TILE_F) f32   output tile (written in epilogue only)
    acc_ref: (B, TILE_F) f32   matmul accumulator (VMEM scratch)
    """
    k = pl.program_id(1)

    @pl.when(k == 0)
    def _():
        acc_ref[...] = jnp.zeros_like(acc_ref)

    if x_resident and n_k > 1:
        start = pl.multiple_of(k * tile_k, tile_k)
        x_blk = x_ref[:, pl.ds(start, tile_k)]
    else:
        x_blk = x_ref[...]

    # Linear (no bias: cancelled exactly by the batch-mean subtraction below).
    # bf16 operands, f32 accumulation on the MXU.
    acc_ref[...] += jnp.dot(x_blk, wt_ref[...], preferred_element_type=jnp.float32)

    @pl.when(k == pl.num_programs(1) - 1)
    def _():
        y = acc_ref[...]                                    # (B, TILE_F) f32
        b = y.shape[0]

        # BatchNorm1d (training mode): stats over the batch (sublane) axis,
        # computed on the MXU (ones(1,B) @ ...) instead of XLU reduces; kept
        # in f32 even though the matmul operands are bf16.
        ones_row = jnp.ones((1, b), jnp.float32)
        mean = jnp.dot(ones_row, y, preferred_element_type=jnp.float32) * inv_b
        d = y - mean                                        # reused twice
        var = jnp.dot(ones_row, d * d, preferred_element_type=jnp.float32) * inv_b

        # Fold gamma into the inverse std: only (1, TILE_F) work here, then a
        # single (B, TILE_F) fused scale+shift.
        scale = p_ref[0:1, :] * jax.lax.rsqrt(var + EPS)
        shift = p_ref[1:2, :]

        # ReLU
        o_ref[...] = jnp.maximum(d * scale + shift, 0.0).astype(o_ref.dtype)


def _pick_tile(padded_dim, candidates, max_tile):
    for c in candidates:
        if c <= max_tile and padded_dim % c == 0:
            return c
    return 128


def encoder_layer(x, w, b, gamma, beta, *, tile_f=None, tile_k=None,
                  matmul_dtype=jnp.bfloat16):
    """x: (B, D_in) f32; w: (D_out, D_in); b/gamma/beta: (D_out,) -> (B, D_out) f32.

    `b` is accepted for API parity with nn.Linear but is not used: training-
    mode BatchNorm's batch-mean subtraction makes a per-feature constant bias
    a mathematical no-op.
    """
    del b  # cancelled exactly by BatchNorm's batch-mean subtraction
    B, D_in = x.shape
    D_out = w.shape[0]
    mm_bytes = jnp.dtype(matmul_dtype).itemsize

    # Pad the feature (lane) dims to multiples of 128. Zero padding is exact
    # for the contraction; padded output columns are sliced off at the end.
    d_in_p = pl.cdiv(D_in, 128) * 128
    d_out_p = pl.cdiv(D_out, 128) * 128

    # --- tile selection (largest MXU-friendly divisor that fits the budget) ---
    if tile_f is None:
        # acc (f32) + double-buffered out (f32) cost 12*B bytes per feature lane.
        max_tf = max(128, (_VMEM_BUDGET // 3) // (12 * B))
        tile_f = _pick_tile(d_out_p, (512, 256, 128), max_tf)
    if tile_k is None:
        max_tk = max(128, (_VMEM_BUDGET // 4) // max(2 * B * mm_bytes, 1))
        tile_k = _pick_tile(d_in_p, (1024, 512, 256, 128), max_tk)

    n_f = d_out_p // tile_f
    n_k = d_in_p // tile_k

    # x residency: DMA x from HBM exactly once if it fits ~1/4 of the budget.
    x_bytes_resident = B * d_in_p * mm_bytes
    x_resident = x_bytes_resident <= _VMEM_BUDGET // 4

    # --- operand prep (layout plumbing in the wrapper, not in-kernel work) ---
    x_p = x if d_in_p == D_in else jnp.pad(x, ((0, 0), (0, d_in_p - D_in)))
    x_p = x_p.astype(matmul_dtype)

    # Pre-transpose W (no in-kernel XLU transpose), pad, cast to bf16.
    w_t = (jnp.zeros((d_in_p, d_out_p), jnp.float32)
           .at[:D_in, :D_out].set(w.T)
           .astype(matmul_dtype))

    # Stack gamma/beta into one f32 parameter slab -> single DMA / BlockSpec.
    # (Padded columns stay gamma=beta=0 -> padded outputs are exact zeros.)
    params = (jnp.zeros((2, d_out_p), jnp.float32)
              .at[0, :D_out].set(gamma.astype(jnp.float32))
              .at[1, :D_out].set(beta.astype(jnp.float32)))

    # --- specs ---
    if x_resident:
        x_spec = pl.BlockSpec((B, d_in_p), lambda f, k: (0, 0))
    else:
        x_spec = pl.BlockSpec((B, tile_k), lambda f, k: (0, k))

    deep_w_buffer = x_resident and n_k > 2
    if deep_w_buffer:
        # W^T is the only per-step-changing input once x is resident; a 3-deep
        # buffer hides small-tile HBM latency.
        w_spec = pl.BlockSpec((tile_k, tile_f), lambda f, k: (k, f),
                              pipeline_mode=pl.Buffered(3))
    else:
        w_spec = pl.BlockSpec((tile_k, tile_f), lambda f, k: (k, f))

    # --- VMEM budget & cost estimate ---
    x_vmem = x_bytes_resident if x_resident else 2 * B * tile_k * mm_bytes
    w_bufs = 3 if deep_w_buffer else 2
    vmem_needed = (x_vmem
                   + w_bufs * tile_k * tile_f * mm_bytes
                   + 2 * 2 * tile_f * 4            # params double-buffered
                   + B * tile_f * 4                # acc scratch
                   + 2 * B * tile_f * 4)           # out double-buffered
    vmem_limit = int(min(max(2 * vmem_needed, 32 * _MIB), 100 * _MIB))

    x_hbm_reads = 1 if x_resident else n_f
    cost = pl.CostEstimate(
        flops=2 * B * d_in_p * d_out_p + 4 * B * d_out_p,
        transcendentals=0,
        bytes_accessed=(x_hbm_reads * B * d_in_p * mm_bytes
                        + d_in_p * d_out_p * mm_bytes
                        + 2 * d_out_p * 4
                        + B * d_out_p * 4),
    )

    kernel = functools.partial(
        encoder_layer_kernel,
        inv_b=1.0 / B, tile_k=tile_k, n_k=n_k, x_resident=x_resident,
    )

    out = pl.pallas_call(
        kernel,
        out_shape=jax.ShapeDtypeStruct((B, d_out_p), jnp.float32),
        grid_spec=pltpu.PrefetchScalarGridSpec(
            num_scalar_prefetch=0,
            grid=(n_f, n_k),
            in_specs=[
                x_spec,                                            # x (bf16)
                w_spec,                                            # W^T tile (bf16)
                pl.BlockSpec((2, tile_f), lambda f, k: (0, f)),    # gamma/beta (f32)
            ],
            out_specs=pl.BlockSpec((B, tile_f), lambda f, k: (0, f)),
            scratch_shapes=[pltpu.VMEM((B, tile_f), jnp.float32)],
        ),
        compiler_params=pltpu.CompilerParams(
            # Feature tiles are independent (BN stats are per-feature) ->
            # "parallel" lets v7x's two TensorCores split them; K is a
            # reduction into the resident accumulator -> "arbitrary".
            dimension_semantics=("parallel", "arbitrary"),
            vmem_limit_bytes=vmem_limit,
        ),
        cost_estimate=cost,
    )(x_p, w_t, params)

    return out[:, :D_out]


def reference(x, w, b, gamma, beta, *, matmul_dtype=jnp.float32):
    y = jnp.dot(x.astype(matmul_dtype), w.T.astype(matmul_dtype),
                preferred_element_type=jnp.float32) + b
    mean = jnp.mean(y, axis=0, keepdims=True)
    var = jnp.mean((y - mean) ** 2, axis=0, keepdims=True)
    y_hat = (y - mean) * jax.lax.rsqrt(var + EPS)
    y_hat = y_hat * gamma + beta
    return jnp.maximum(y_hat, 0.0)


if __name__ == "__main__":
    # Small shapes consistent with the module: batch=8, input_size=32, output_size=16.
    B, D_in, D_out = 8, 32, 16

    key = jax.random.PRNGKey(0)
    kx, kw, kb = jax.random.split(key, 3)

    x = jax.random.normal(kx, (B, D_in), dtype=jnp.float32)

    # Deterministic parameter init (PyTorch-Linear-like uniform bound).
    bound = 1.0 / (D_in ** 0.5)
    w = jax.random.uniform(kw, (D_out, D_in), jnp.float32, -bound, bound)
    b = jax.random.uniform(kb, (D_out,), jnp.float32, -bound, bound)
    gamma = jnp.ones((D_out,), jnp.float32)   # BatchNorm1d weight
    beta = jnp.zeros((D_out,), jnp.float32)   # BatchNorm1d bias

    out = encoder_layer(x, w, b, gamma, beta)
    out = jax.block_until_ready(out)
    assert out.shape == (B, D_out)

    # Tight check against a reference using the same bf16 matmul operands
    # (f32 accumulation), i.e. identical arithmetic up to reduction order.
    ref_bf16 = reference(x, w, b, gamma, beta, matmul_dtype=jnp.bfloat16)
    assert jnp.allclose(out, ref_bf16, atol=1e-4, rtol=1e-4), "mismatch vs bf16 reference"

    # Looser check against the full-f32 module semantics (bf16 operand error).
    ref_f32 = reference(x, w, b, gamma, beta, matmul_dtype=jnp.float32)
    assert jnp.allclose(out, ref_f32, atol=5e-2, rtol=5e-2), "mismatch vs f32 reference"

    print("KERNEL_OK")
</pallas_src>

<mosaic_0001>
module attributes {stable_mosaic.version = 11 : i64} {
  func.func @encoder_layer_kernel(%arg0: i32, %arg1: i32, %arg2: memref<8x128xbf16, #tpu.memory_space<vmem>>, %arg3: memref<128x128xbf16, #tpu.memory_space<vmem>>, %arg4: memref<2x128xf32, #tpu.memory_space<vmem>>, %arg5: memref<8x128xf32, #tpu.memory_space<vmem>>, %arg6: memref<8x128xf32, #tpu.memory_space<vmem>>) attributes {dimension_semantics = [#tpu.dimension_semantics<parallel>, #tpu.dimension_semantics<arbitrary>], iteration_bounds = array<i64: 1, 1>, scalar_prefetch = 0 : i64, scratch_operands = 1 : i64, tpu.core_type = #tpu.core_type<tc>, window_params = [{pipeline_mode = #tpu.pipeline_mode<synchronous>, transform_indices = @transform_0, window_bounds = array<i64: 8, 128>}, {transform_indices = @transform_1, window_bounds = array<i64: 128, 128>}, {transform_indices = @transform_2, window_bounds = array<i64: 2, 128>}, {transform_indices = @transform_3, window_bounds = array<i64: 8, 128>}]} {
    %c0_i32 = arith.constant 0 : i32
    %0 = arith.cmpi eq, %arg1, %c0_i32 : i32
    %1 = arith.extui %0 : i1 to i32
    %c0_i32_0 = arith.constant 0 : i32
    %2 = arith.cmpi ne, %1, %c0_i32_0 : i32
    scf.if %2 {
      %cst_10 = arith.constant 0.000000e+00 : f32
      %12 = vector.broadcast %cst_10 : f32 to vector<8x128xf32>
      %c0_11 = arith.constant 0 : index
      %c0_12 = arith.constant 0 : index
      %13 = vector.load %arg6[%c0_11, %c0_12] : memref<8x128xf32, #tpu.memory_space<vmem>>, vector<8x128xf32>
      tpu.vector_store %arg6[%c0_11, %c0_12], %12 {strides = array<i32>} : memref<8x128xf32, #tpu.memory_space<vmem>>, vector<8x128xf32>,
    } else {
    }
    %c0 = arith.constant 0 : index
    %c0_1 = arith.constant 0 : index
    %3 = vector.load %arg2[%c0, %c0_1] : memref<8x128xbf16, #tpu.memory_space<vmem>>, vector<8x128xbf16>
    %c0_2 = arith.constant 0 : index
    %c0_3 = arith.constant 0 : index
    %4 = vector.load %arg6[%c0_2, %c0_3] : memref<8x128xf32, #tpu.memory_space<vmem>>, vector<8x128xf32>
    %c0_4 = arith.constant 0 : index
    %c0_5 = arith.constant 0 : index
    %5 = vector.load %arg3[%c0_4, %c0_5] : memref<128x128xbf16, #tpu.memory_space<vmem>>, vector<128x128xbf16>
    %cst = arith.constant dense<0.000000e+00> : vector<8x128xf32>
    %6 = tpu.matmul %3, %5, %cst {dimension_numbers = #tpu.dot_dimension_numbers<[1], [0], [0], [1], [0, 0, 1, 1], [], []>} : vector<8x128xbf16>, vector<128x128xbf16>, vector<8x128xf32> -> vector<8x128xf32>
    %7 = arith.addf %4, %6 : vector<8x128xf32>
    %c0_6 = arith.constant 0 : index
    %c0_7 = arith.constant 0 : index
    %8 = vector.load %arg6[%c0_6, %c0_7] : memref<8x128xf32, #tpu.memory_space<vmem>>, vector<8x128xf32>
    tpu.vector_store %arg6[%c0_6, %c0_7], %7 {strides = array<i32>} : memref<8x128xf32, #tpu.memory_space<vmem>>, vector<8x128xf32>,
    %c0_i32_8 = arith.constant 0 : i32
    %9 = arith.cmpi eq, %arg1, %c0_i32_8 : i32
    %10 = arith.extui %9 : i1 to i32
    %c0_i32_9 = arith.constant 0 : i32
    %11 = arith.cmpi ne, %10, %c0_i32_9 : i32
    scf.if %11 {
      %c0_10 = arith.constant 0 : index
      %c0_11 = arith.constant 0 : index
      %12 = vector.load %arg6[%c0_10, %c0_11] : memref<8x128xf32, #tpu.memory_space<vmem>>, vector<8x128xf32>
      %cst_12 = arith.constant 1.000000e+00 : f32
      %13 = vector.broadcast %cst_12 : f32 to vector<1x8xf32>
      %cst_13 = arith.constant dense<0.000000e+00> : vector<1x128xf32>
      %14 = tpu.matmul %13, %12, %cst_13 {dimension_numbers = #tpu.dot_dimension_numbers<[1], [0], [0], [1], [0, 0, 1, 1], [], []>} : vector<1x8xf32>, vector<8x128xf32>, vector<1x128xf32> -> vector<1x128xf32>
      %cst_14 = arith.constant 1.250000e-01 : f32
      %15 = vector.broadcast %cst_14 : f32 to vector<1x128xf32>
      %16 = arith.mulf %14, %15 : vector<1x128xf32>
      %17 = vector.broadcast %16 : vector<1x128xf32> to vector<8x128xf32>
      %18 = arith.subf %12, %17 : vector<8x128xf32>
      %19 = arith.mulf %18, %18 : vector<8x128xf32>
      %cst_15 = arith.constant dense<0.000000e+00> : vector<1x128xf32>
      %20 = tpu.matmul %13, %19, %cst_15 {dimension_numbers = #tpu.dot_dimension_numbers<[1], [0], [0], [1], [0, 0, 1, 1], [], []>} : vector<1x8xf32>, vector<8x128xf32>, vector<1x128xf32> -> vector<1x128xf32>
      %cst_16 = arith.constant 1.250000e-01 : f32
      %21 = vector.broadcast %cst_16 : f32 to vector<1x128xf32>
      %22 = arith.mulf %20, %21 : vector<1x128xf32>
      %c0_17 = arith.constant 0 : index
      %c0_18 = arith.constant 0 : index
      %23 = vector.load %arg4[%c0_17, %c0_18] : memref<2x128xf32, #tpu.memory_space<vmem>>, vector<1x128xf32>
      %cst_19 = arith.constant 9.99999974E-6 : f32
      %24 = vector.broadcast %cst_19 : f32 to vector<1x128xf32>
      %25 = arith.addf %22, %24 : vector<1x128xf32>
      %26 = math.rsqrt %25 : vector<1x128xf32>
      %27 = arith.mulf %23, %26 : vector<1x128xf32>
      %c1 = arith.constant 1 : index
      %c0_20 = arith.constant 0 : index
      %28 = vector.load %arg4[%c1, %c0_20] : memref<2x128xf32, #tpu.memory_space<vmem>>, vector<1x128xf32>
      %29 = vector.broadcast %27 : vector<1x128xf32> to vector<8x128xf32>
      %30 = arith.mulf %18, %29 : vector<8x128xf32>
      %31 = vector.broadcast %28 : vector<1x128xf32> to vector<8x128xf32>
      %32 = arith.addf %30, %31 : vector<8x128xf32>
      %cst_21 = arith.constant 0.000000e+00 : f32
      %33 = vector.broadcast %cst_21 : f32 to vector<8x128xf32>
      %34 = arith.maximumf %32, %33 : vector<8x128xf32>
      %c0_22 = arith.constant 0 : index
      %c0_23 = arith.constant 0 : index
      %35 = vector.load %arg5[%c0_22, %c0_23] : memref<8x128xf32, #tpu.memory_space<vmem>>, vector<8x128xf32>
      tpu.vector_store %arg5[%c0_22, %c0_23], %34 {strides = array<i32>} : memref<8x128xf32, #tpu.memory_space<vmem>>, vector<8x128xf32>,
    } else {
    }
    return
  }
  func.func @transform_0(%arg0: i32, %arg1: i32) -> (i32, i32) {
    %c0_i32 = arith.constant 0 : i32
    %c0_i32_0 = arith.constant 0 : i32
    %c0_i32_1 = arith.constant 0 : i32
    return %c0_i32, %c0_i32_0 : i32, i32
  }
  func.func @transform_1(%arg0: i32, %arg1: i32) -> (i32, i32) {
    %c0_i32 = arith.constant 0 : i32
    return %arg1, %arg0 : i32, i32
  }
  func.func @transform_2(%arg0: i32, %arg1: i32) -> (i32, i32) {
    %c0_i32 = arith.constant 0 : i32
    %c0_i32_0 = arith.constant 0 : i32
    return %c0_i32, %arg0 : i32, i32
  }
  func.func @transform_3(%arg0: i32, %arg1: i32) -> (i32, i32) {
    %c0_i32 = arith.constant 0 : i32
    %c0_i32_0 = arith.constant 0 : i32
    return %c0_i32, %arg0 : i32, i32
  }
}

</mosaic_0001>

<bundles_post_ra>
// kernel: tpu_custom_call.1
= control target key start
LH: loop header
LB: loop body
LE: loop exit
PB: predicated region body
PF: predicated region fallthrough
CT: control target
= control target key end

     0   :  { %8 = vsyncpa [#allocation4], 0  ;;  %s428_s0 = inlined_call_operand.hbm [shape: bf16[8,128], index: 0, kind: input, shape index: {}]   ;;  %s429_s1 = inlined_call_operand.hbm [shape: bf16[128,128], index: 1, kind: input, shape index: {}]   ;;  %s430_s2 = inlined_call_operand.hbm [shape: f32[2,128], index: 2, kind: input, shape index: {}]   ;;  %s431_s3 = inlined_call_operand.hbm [shape: f32[8,128], index: 3, kind: output, shape index: {}]  }
   0x1   :  { %9 = vsyncpa [#allocation7], 0  ;;  %s26_s14 = sshll.u32 %s429_s1, 4  ;;  %s27_s14 = int_to_ptr.hbm [resolvable:$true] %s26_s14 }
   0x2   :  { %10 = vsyncpa [#allocation5], 0  ;;  %s389_s15 = smov [#allocation6]   ;;  %s16_s19 = sshll.u32 %s428_s0, 4  ;;  %s17_s19 = int_to_ptr.hbm [resolvable:$true] %s16_s19 }
   0x3   :  { %s28_s16 = sshll.u32 %s389_s15, 4  ;;  %s390_s20 = smov 64   ;;  %s29_s16 = int_to_ptr.vmem [resolvable:$true] %s28_s16 }
   0x4   :  { %s391_s21 = smov 4   ;;  %s392_s22 = smov [#allocation3]  }
   0x5   :  { %34 = dma.hbm_to_vmem [thread:$0]  %s27_s14, 1024, %s29_s16, [#allocation7], %s390_s20, %s390_s20, %s391_s21  }
   0x6   :  { %s18_s23 = sshll.u32 %s392_s22, 4  ;;  %s40_s26 = sshll.u32 %s430_s2, 4  ;;  %s19_s23 = int_to_ptr.vmem [resolvable:$true] %s18_s23  ;;  %s41_s26 = int_to_ptr.hbm [resolvable:$true] %s40_s26 }
   0x7   :  { %21 = dma.hbm_to_vmem [thread:$0]  %s17_s19, 64, %s19_s23, [#allocation4]  }
   0x8   :  { %s393_s1 = smov [#allocation8]  }
   0x9   :  { %s42_s27 = sshll.u32 %s393_s1, 4  ;;  %s43_s27 = int_to_ptr.vmem [resolvable:$true] %s42_s27 }
   0xa   :  { %45 = dma.hbm_to_vmem [thread:$0]  %s41_s26, 32, %s43_s27, [#allocation7]  }
   0xb   :  { %383 = dma.done.wait [#allocation4], 64  }
   0xc   :  { %384 = vsyncadd [#allocation4], 4294967232 }
   0xd   :  { %385 = dma.done.wait [#allocation7], 1056  }
   0xe   :  { %386 = vsyncadd [#allocation7], 4294966240  ;;  %v276_v0 = vld [vmem:[#allocation6 + $0x38] sm:$0xff]  ;;  %v275_v1 = vld [vmem:[#allocation6 + $0x30] sm:$0xff]  ;;  %vm148_vm0 = vcmask 64512   ;;  %v394_v10 = vmov 1.0  }
   0xf   :  { %129 = vmatpush.bf16.msra.mxu0 %v276_v0  ;;  %v274_v2 = vld [vmem:[#allocation6 + $0x28] sm:$0xff]  ;;  %v273_v3 = vld [vmem:[#allocation6 + $0x20] sm:$0xff]  ;;  %v272_v4 = vld [vmem:[#allocation6 + $0x18] sm:$0xff]  ;;  %s395_s0 = smov [#allocation9]   ;;  %s224_s30 = sshll.u32 %s431_s3, 4  ;;  %s225_s30 = int_to_ptr.hbm [resolvable:$true] %s224_s30 }
  0x10   :  { %v271_v5 = vld [vmem:[#allocation6 + $0x10] sm:$0xff]  ;;  %v270_v6 = vld [vmem:[#allocation6 + $0x8] sm:$0xff]  ;;  %v269_v7 = vld [vmem:[#allocation6] sm:$0xff]  ;;  %s222_s2 = sshll.u32 %s395_s0, 4  ;;  %s223_s2 = int_to_ptr.vmem [resolvable:$true] %s222_s2 }
  0x11   :  { %v63_v8 = vld [vmem:[#allocation3] sm:$0xf]  ;;  %v197_v25 = vld [vmem:[#allocation8] sm:$0x1]  ;;  %v284_v30 = vld [vmem:[#allocation8 + $0x1] ss:$0 sm:$0xff] }
  0x13   :  { %130 = vmatpush.bf16.msra.mxu0 %v275_v1 }
  0x17   :  { %131 = vmatpush.bf16.msra.mxu0 %v274_v2 }
  0x1b   :  { %132 = vmatpush.bf16.msra.mxu0 %v273_v3 }
  0x1f   :  { %133 = vmatpush.bf16.msra.mxu0 %v272_v4 }
  0x23   :  { %134 = vmatpush.bf16.msra.mxu0 %v271_v5 }
  0x27   :  { %135 = vmatpush.bf16.msra.mxu0 %v270_v6 }
  0x2b   :  { %136 = vmatpush.bf16.msra.mxu0 %v269_v7 }
  0x2e   :  { %137 = vmatmul.bf16.vlgmr.msra.gmra.mxu0 %v63_v8 }
  0xab   :  { %v138_v9 = vpop.f32.mrf.mxu0 }
  0xac   :  { %167 = vmatpush.msra.mxu1 %v138_v9 }
  0xad   :  { %267 = vmatmul.msk.f32.vlgmr.msra.gmra.mxu1 %vm148_vm0, %v394_v10 }
  0xb3   :  { %v140_v11 = vpop.f32.mrf.mxu0 }
 0x12a   :  { %v169_v12 = vpop.f32.mrf.mxu1 }
 0x12b   :  { %v172_v13 = vmul.f32 0.125, %v169_v12 }
 0x12d   :  { %v173_v14 = vperm.slane %v172_v13, 0 }
 0x12f   :  { %v174_v15 = vsub.f32 %v138_v9, %v173_v14 }
 0x131   :  { %v175_v16 = vmul.f32 %v174_v15, %v174_v15 }
 0x133   :  { %191 = vmatpush.msra.mxu2 %v175_v16 }
 0x134   :  { %268 = vmatmul.msk.f32.vlgmr.msra.gmra.mxu2 %vm148_vm0, %v394_v10 }
 0x1b7   :  { %v193_v17 = vpop.f32.mrf.mxu2 }
 0x1b8   :  { %v196_v18 = vmul.f32 0.125, %v193_v17 }
 0x1ba   :  { %v198_v19 = vadd.f32 1e-05, %v196_v18 }
 0x1bc   :  { %285 = vrsqrt.f32 %v198_v19  ;;  %vm205_vm2 = vweird.f32 %v198_v19 }
 0x1c2   :  { %v286_v20 = vpop.eup %285 }
 0x1c3   :  { %v200_v21 = vmul.f32 %v286_v20, %v198_v19  ;;  %vm206_vm1 = vweird.f32 %v286_v20 }
 0x1c4   :  { %vm207_vm3 = vmor %vm205_vm2, %vm206_vm1 }
 0x1c5   :  { %v201_v22 = vmul.f32 %v286_v20, %v200_v21 }
 0x1c7   :  { %v202_v23 = vmul.f32 0.5, %v201_v22 }
 0x1c9   :  { %v203_v24 = vsub.f32 1.5, %v202_v23 }
 0x1cb   :  { %v204_v26 = vmul.f32 %v286_v20, %v203_v24 }
 0x1cd   :  { %v208_v27 = vsel %vm207_vm3, %v286_v20, %v204_v26 }
 0x1ce   :  { %v209_v28 = vmul.f32 %v208_v27, %v197_v25 }
 0x1d0   :  { %v211_v29 = vperm.slane %v209_v28, 0 }
 0x1d2   :  { %v212_v31 = vmul.f32 %v211_v29, %v174_v15 }
 0x1d4   :  { %v214_v32 = vadd.f32 %v284_v30, %v212_v31 }
 0x1d6   :  { %v215_v33 = vmax.f32 %v214_v32, 0.0 }
 0x1d8   :  { %216 = vst [vmem:[#allocation9] sm:$0xff] %v215_v33 }
 0x1d9   :  { %227 = dma.vmem_to_hbm [thread:$0]  %s223_s2, 128, %s225_s30, [#allocation5]  }
 0x1da   :  { %387 = dma.done.wait [#allocation5], 128  }
 0x1db   :  { %388 = vsyncadd [#allocation5], 4294967168 }
 0x1dc   :  { %232 = vsyncpa [#allocation4], 1 }
 0x1dd   :  { %233 = vsyncpa [#allocation7], 1 }
 0x1de   :  { %234 = vsyncpa [#allocation5], 1 }

</bundles_post_ra>
